<compile_context>
chip_gen: v5e
topology: v5e:2x2
jax: 0.10.0
libtpu: 0.0.40
codegen_flags: <defaults>
</compile_context>

<pallas_src>
import math

import jax
import jax.numpy as jnp
from jax.experimental import pallas as pl
from jax.experimental.pallas import tpu as pltpu


# ---------------------------------------------------------------------------
# PE table construction (module-init analogue of register_buffer).
# ---------------------------------------------------------------------------
def _build_pe(d_model: int, max_len: int = 2048, dtype=jnp.float32) -> jnp.ndarray:
    """Sinusoidal positional-encoding table, (max_len, d_model).

    pe[:, 0::2] = sin(pos * div_term);  pe[:, 1::2] = cos(pos * div_term)
    NOTE: for odd d_model the cos half is truncated; vanilla PyTorch would
    raise a shape error there, so behaviour silently diverges for odd E.
    """
    position = jnp.arange(max_len, dtype=jnp.float32)[:, None]                 # (L, 1)
    div_term = jnp.exp(
        jnp.arange(0, d_model, 2, dtype=jnp.float32) * (-math.log(10000.0) / d_model)
    )                                                                           # (ceil(E/2),)
    angles = position * div_term[None, :]                                       # (L, ceil(E/2))
    pe = jnp.zeros((max_len, d_model), dtype=jnp.float32)
    pe = pe.at[:, 0::2].set(jnp.sin(angles))
    pe = pe.at[:, 1::2].set(jnp.cos(angles)[:, : d_model // 2])
    return pe.astype(dtype)


# ---------------------------------------------------------------------------
# VMEM budget / compiler params (generation aware, with a safe fallback).
# ---------------------------------------------------------------------------
def _compute_vmem_limit_bytes() -> int:
    cap = 128 << 20  # v5e / v6e physical VMEM; safe fallback
    try:
        info = pltpu.get_tpu_info()
        cap = int(getattr(info, "vmem_capacity_bytes", cap))
    except Exception:
        pass
    # Never below the 32 MiB default, never above 64 MiB; ~5/8 of physical on
    # 64-MiB parts (v7x -> ~40 MiB), 64 MiB on 128-MiB parts (v5e/v6e).
    return int(max(32 << 20, min(64 << 20, (cap * 5) // 8)))


_VMEM_LIMIT = _compute_vmem_limit_bytes()
_BUDGET = 4 << 20  # ~4 MiB per live buffer; 3 arrays x 2 buffers ~= 24 MiB


def _cparams(dim_sem):
    return pltpu.CompilerParams(
        dimension_semantics=dim_sem, vmem_limit_bytes=_VMEM_LIMIT
    )


# ---------------------------------------------------------------------------
# Kernel bodies.  Add in f32 (PE table stays f32), round once to out dtype.
# ---------------------------------------------------------------------------
def _add_kernel(x_ref, pe_ref, o_ref):
    o_ref[...] = (x_ref[...].astype(jnp.float32) + pe_ref[...]).astype(o_ref.dtype)


def _make_grouped_kernel(k: int, R: int, C: int):
    """x block is (k*R, C); pe block is (R, C); broadcast PE over the k groups."""

    def kernel(x_ref, pe_ref, o_ref):
        xg = x_ref[...].astype(jnp.float32).reshape(k, R, C)
        yg = xg + pe_ref[...][None, :, :]
        o_ref[...] = yg.reshape(k * R, C).astype(o_ref.dtype)

    return kernel


# ---------------------------------------------------------------------------
# Tiling helpers.
# ---------------------------------------------------------------------------
def _pick_row_tile(R: int, C: int, itemsize: int, budget: int) -> int:
    """Largest multiple-of-8 divisor of R whose (tile, C) block fits the budget."""
    divs8 = [d for d in range(8, R + 1, 8) if R % d == 0] if R % 8 == 0 else []
    fit = [d for d in divs8 if d * C * itemsize <= budget]
    if fit:
        return max(fit)
    if divs8:
        return min(divs8)
    return R


def _pick_batch_group(B: int, R: int, C: int, itemsize: int, budget: int) -> int:
    """How many batch rows to group per block when the whole (R, C) slab is small.

    Legality: (k*R) % 8 == 0 or k == B (block equals the full row extent).
    Prefer B // k >= 2 so both v7x TensorCores get at least one grid step.
    """
    divs = [d for d in range(1, B + 1) if B % d == 0]
    legal = [k for k in divs if (k * R) % 8 == 0 or k == B]
    fitting = [k for k in legal if k * R * C * itemsize <= budget]
    preferred = [k for k in fitting if B // k >= 2]
    if preferred:
        return max(preferred)
    if fitting:
        return max(fitting)
    return min(legal)


def _pick_lane_view(SE: int):
    """Find C (multiple of 128 dividing S*E).  Prefer the largest C for which
    R = SE // C is a multiple of 8 (dense sublanes AND dense lanes)."""
    best_any = None
    best_dense = None
    c = 128
    while c <= SE:
        if SE % c == 0:
            best_any = c
            if (SE // c) % 8 == 0:
                best_dense = c
        c += 128
    return best_dense, best_any


# ---------------------------------------------------------------------------
# Dispatchers.
# ---------------------------------------------------------------------------
def _run_rows(x2, pe2, B, R, C):
    """x2: (B*R, C) activations; pe2: (>=R, C) f32 PE view (row block r of pe2
    is the PE slab for row block r of any batch)."""
    dtype = x2.dtype
    itemsize = jnp.dtype(dtype).itemsize
    BR = B * R

    if R * C * itemsize > _BUDGET and R % 8 == 0:
        # -- tile within R; grid = (n_r, B) with B INNERMOST so the PE block
        #    index is constant across consecutive steps (PE DMA is skipped on
        #    revisit).  Do not flatten this grid.
        TR = _pick_row_tile(R, C, itemsize, _BUDGET)
        n_r = R // TR
        return pl.pallas_call(
            _add_kernel,
            out_shape=jax.ShapeDtypeStruct((BR, C), dtype),
            grid_spec=pltpu.PrefetchScalarGridSpec(
                num_scalar_prefetch=0,
                grid=(n_r, B),
                in_specs=[
                    pl.BlockSpec((TR, C), lambda r, b: (b * n_r + r, 0)),
                    pl.BlockSpec((TR, C), lambda r, b: (r, 0)),
                ],
                out_specs=pl.BlockSpec((TR, C), lambda r, b: (b * n_r + r, 0)),
            ),
            compiler_params=_cparams(("parallel", "parallel")),
        )(x2, pe2)

    # -- the whole (R, C) slab is small: group k batch rows per block so each
    #    grid step still moves ~_BUDGET bytes; PE block index is constant so it
    #    is read from HBM only once per core.
    k = _pick_batch_group(B, R, C, itemsize, _BUDGET)
    n_b = B // k
    kernel = _add_kernel if k == 1 else _make_grouped_kernel(k, R, C)
    return pl.pallas_call(
        kernel,
        out_shape=jax.ShapeDtypeStruct((BR, C), dtype),
        grid_spec=pltpu.PrefetchScalarGridSpec(
            num_scalar_prefetch=0,
            grid=(n_b,),
            in_specs=[
                pl.BlockSpec((k * R, C), lambda i: (i, 0)),
                pl.BlockSpec((R, C), lambda i: (0, 0)),
            ],
            out_specs=pl.BlockSpec((k * R, C), lambda i: (i, 0)),
        ),
        compiler_params=_cparams(("parallel",)),
    )(x2, pe2)


def _run_generic(x, pe_s):
    """3-D fallback (E not expressible as a lane-dense view).  Batch dim is
    squeezed out of the kernel refs; lanes are padded (unavoidable here)."""
    B, S, E = x.shape
    dtype = x.dtype
    itemsize = jnp.dtype(dtype).itemsize
    TS = _pick_row_tile(S, E, itemsize, _BUDGET) if S % 8 == 0 else S

    if TS < S:
        n_s = S // TS
        return pl.pallas_call(
            _add_kernel,
            out_shape=jax.ShapeDtypeStruct((B, S, E), dtype),
            grid_spec=pltpu.PrefetchScalarGridSpec(
                num_scalar_prefetch=0,
                grid=(n_s, B),
                in_specs=[
                    pl.BlockSpec((None, TS, E), lambda s, b: (b, s, 0)),
                    pl.BlockSpec((TS, E), lambda s, b: (s, 0)),
                ],
                out_specs=pl.BlockSpec((None, TS, E), lambda s, b: (b, s, 0)),
            ),
            compiler_params=_cparams(("parallel", "parallel")),
        )(x, pe_s)

    return pl.pallas_call(
        _add_kernel,
        out_shape=jax.ShapeDtypeStruct((B, S, E), dtype),
        grid_spec=pltpu.PrefetchScalarGridSpec(
            num_scalar_prefetch=0,
            grid=(B,),
            in_specs=[
                pl.BlockSpec((None, S, E), lambda b: (b, 0, 0)),
                pl.BlockSpec((S, E), lambda b: (0, 0)),
            ],
            out_specs=pl.BlockSpec((None, S, E), lambda b: (b, 0, 0)),
        ),
        compiler_params=_cparams(("parallel",)),
    )(x, pe_s)


# ---------------------------------------------------------------------------
# Public forward: out = x + pe[:S][None]
# ---------------------------------------------------------------------------
def positional_encoding_forward(x: jnp.ndarray, pe: jnp.ndarray) -> jnp.ndarray:
    """x: (B, S, E);  pe: (max_len, E) f32 table.  Returns x + pe[:S][None]."""
    B, S, E = x.shape
    max_len = pe.shape[0]
    if S > max_len:
        raise ValueError(f"sequence length {S} exceeds max_len {max_len}")
    if pe.shape[1] != E:
        raise ValueError(f"d_model mismatch: x has E={E}, pe has {pe.shape[1]}")

    itemsize = jnp.dtype(x.dtype).itemsize
    SE = S * E

    rows = None  # (R, C, pe_view) for the lane-dense 2-D "rows" path

    # ---- Path A: E is already lane-dense --------------------------------
    if E % 128 == 0 and (S % 8 == 0 or B * SE * itemsize <= _BUDGET):
        if S % 8 == 0:
            pe_view = pe            # pass the full f32 table; blocks stay in [:S]
        else:
            pe_view = pe[:S]        # needed so the (S, E) block equals full dims
        rows = (S, E, pe_view)

    # ---- Path B: refactor (S, E) into a dense (R, C) view ----------------
    elif SE % 128 == 0:
        dense_c, any_c = _pick_lane_view(SE)
        C = None
        if dense_c is not None:
            C = dense_c                                   # R = SE//C multiple of 8
        elif any_c is not None and B * SE * itemsize <= _BUDGET:
            C = any_c                                     # tiny: full-array block
        if C is not None:
            R = SE // C
            rows = (R, C, pe[:S].reshape(R, C))

    if rows is not None:
        R, C, pe_view = rows
        x2 = x.reshape(B * R, C)          # contiguous view — free in XLA
        out2 = _run_rows(x2, pe_view, B, R, C)
        return out2.reshape(B, S, E)

    # ---- Path C: generic 3-D fallback ------------------------------------
    # TODO(synk): lanes are padded when E is not a multiple of 128 and S*E is
    # not either; a cross-row repack would need a gather/scatter not worth it
    # for this op.
    return _run_generic(x, pe[:S])


if __name__ == "__main__":
    MAX_LEN = 2048
    key = jax.random.PRNGKey(0)
    k1, k2, k3 = jax.random.split(key, 3)

    # --- test 1: small (B, S, E) from the module contract (path B, grouped) ---
    B, S, E = 2, 8, 32
    x = jax.random.normal(k1, (B, S, E), dtype=jnp.float32)
    pe = _build_pe(d_model=E, max_len=MAX_LEN)
    out = jax.block_until_ready(positional_encoding_forward(x, pe))
    ref = x + pe[:S][None, :, :]
    assert out.shape == (B, S, E)
    assert jnp.allclose(out, ref, atol=1e-6), "mismatch vs reference (f32, path B)"

    # --- test 2: lane-dense path A, f32 and bf16 activations ------------------
    B2, S2, E2 = 2, 16, 128
    x2 = jax.random.normal(k2, (B2, S2, E2), dtype=jnp.float32)
    pe2 = _build_pe(d_model=E2, max_len=MAX_LEN)
    out2 = jax.block_until_ready(positional_encoding_forward(x2, pe2))
    ref2 = x2 + pe2[:S2][None, :, :]
    assert jnp.allclose(out2, ref2, atol=1e-6), "mismatch vs reference (f32, path A)"

    x2_bf16 = x2.astype(jnp.bfloat16)
    out_bf16 = jax.block_until_ready(positional_encoding_forward(x2_bf16, pe2))
    # kernel adds in f32 and rounds the sum once (closer to PyTorch's promoted add)
    ref_bf16 = (x2_bf16.astype(jnp.float32) + pe2[:S2][None, :, :]).astype(jnp.bfloat16)
    assert out_bf16.dtype == jnp.bfloat16
    assert jnp.allclose(
        out_bf16.astype(jnp.float32), ref_bf16.astype(jnp.float32), atol=5e-2
    ), "mismatch vs reference (bf16, path A)"

    # --- test 3: odd feature dim -> generic 3-D fallback (path C) -------------
    B3, S3, E3 = 2, 8, 20
    x3 = jax.random.normal(k3, (B3, S3, E3), dtype=jnp.float32)
    pe3 = _build_pe(d_model=E3, max_len=MAX_LEN)
    out3 = jax.block_until_ready(positional_encoding_forward(x3, pe3))
    ref3 = x3 + pe3[:S3][None, :, :]
    assert jnp.allclose(out3, ref3, atol=1e-6), "mismatch vs reference (f32, path C)"

    print("KERNEL_OK")
</pallas_src>

<mosaic_0001>
module attributes {stable_mosaic.version = 11 : i64} {
  func.func @kernel(%arg0: i32, %arg1: memref<2x256xf32, #tpu.memory_space<vmem>>, %arg2: memref<1x256xf32, #tpu.memory_space<vmem>>, %arg3: memref<2x256xf32, #tpu.memory_space<vmem>>) attributes {dimension_semantics = [#tpu.dimension_semantics<parallel>], iteration_bounds = array<i64: 1>, scalar_prefetch = 0 : i64, scratch_operands = 0 : i64, tpu.core_type = #tpu.core_type<tc>, window_params = [{transform_indices = @transform_0, window_bounds = array<i64: 2, 256>}, {pipeline_mode = #tpu.pipeline_mode<synchronous>, transform_indices = @transform_1, window_bounds = array<i64: 1, 256>}, {transform_indices = @transform_2, window_bounds = array<i64: 2, 256>}]} {
    %c0 = arith.constant 0 : index
    %c0_0 = arith.constant 0 : index
    %0 = vector.load %arg1[%c0, %c0_0] : memref<2x256xf32, #tpu.memory_space<vmem>>, vector<2x256xf32>
    %1 = vector.shape_cast %0 : vector<2x256xf32> to vector<2x1x256xf32>
    %c0_1 = arith.constant 0 : index
    %c0_2 = arith.constant 0 : index
    %2 = vector.load %arg2[%c0_1, %c0_2] : memref<1x256xf32, #tpu.memory_space<vmem>>, vector<1x256xf32>
    %3 = vector.shape_cast %2 : vector<1x256xf32> to vector<1x1x256xf32>
    %4 = vector.broadcast %3 : vector<1x1x256xf32> to vector<2x1x256xf32>
    %5 = arith.addf %1, %4 : vector<2x1x256xf32>
    %6 = vector.shape_cast %5 : vector<2x1x256xf32> to vector<2x256xf32>
    %c0_3 = arith.constant 0 : index
    %c0_4 = arith.constant 0 : index
    %7 = vector.load %arg3[%c0_3, %c0_4] : memref<2x256xf32, #tpu.memory_space<vmem>>, vector<2x256xf32>
    tpu.vector_store %arg3[%c0_3, %c0_4], %6 {strides = array<i32>} : memref<2x256xf32, #tpu.memory_space<vmem>>, vector<2x256xf32>,
    return
  }
  func.func @transform_0(%arg0: i32) -> (i32, i32) {
    %c0_i32 = arith.constant 0 : i32
    %c0_i32_0 = arith.constant 0 : i32
    return %arg0, %c0_i32 : i32, i32
  }
  func.func @transform_1(%arg0: i32) -> (i32, i32) {
    %c0_i32 = arith.constant 0 : i32
    %c0_i32_0 = arith.constant 0 : i32
    %c0_i32_1 = arith.constant 0 : i32
    return %c0_i32, %c0_i32_0 : i32, i32
  }
  func.func @transform_2(%arg0: i32) -> (i32, i32) {
    %c0_i32 = arith.constant 0 : i32
    %c0_i32_0 = arith.constant 0 : i32
    return %arg0, %c0_i32 : i32, i32
  }
}

</mosaic_0001>

<bundles_post_ra>
// kernel: tpu_custom_call.1
= control target key start
LH: loop header
LB: loop body
LE: loop exit
PB: predicated region body
PF: predicated region fallthrough
CT: control target
= control target key end

     0   :  { %7 = vsyncpa [#allocation3], 0  ;;  %s197_s0 = inlined_call_operand.hbm [shape: f32[2,256], index: 0, kind: input, shape index: {}]   ;;  %s198_s1 = inlined_call_operand.hbm [shape: f32[1,256], index: 1, kind: input, shape index: {}]   ;;  %s199_s2 = inlined_call_operand.hbm [shape: f32[2,256], index: 2, kind: output, shape index: {}]  }
   0x1   :  { %8 = vsyncpa [#allocation6], 0 }
   0x2   :  { %9 = vsyncpa [#allocation4], 0  ;;  %s15_s11 = sshll.u32 %s197_s0, 4  ;;  %s170_s12 = smov [#allocation2]   ;;  %s16_s11 = int_to_ptr.hbm [resolvable:$true] %s15_s11 }
   0x3   :  { %s17_s13 = sshll.u32 %s170_s12, 4  ;;  %s26_s16 = sshll.u32 %s198_s1, 4  ;;  %s18_s13 = int_to_ptr.vmem [resolvable:$true] %s17_s13  ;;  %s27_s16 = int_to_ptr.hbm [resolvable:$true] %s26_s16 }
   0x4   :  { %20 = dma.hbm_to_vmem [thread:$0]  %s16_s11, 64, %s18_s13, [#allocation3]  }
   0x5   :  { %s171_s17 = smov [#allocation5]  }
   0x6   :  { %s28_s18 = sshll.u32 %s171_s17, 4  ;;  %s29_s18 = int_to_ptr.vmem [resolvable:$true] %s28_s18 }
   0x7   :  { %31 = dma.hbm_to_vmem [thread:$0]  %s27_s16, 32, %s29_s18, [#allocation6]  }
   0x8   :  { %164 = dma.done.wait [#allocation3], 64  }
   0x9   :  { %165 = vsyncadd [#allocation3], 4294967232 }
   0xa   :  { %166 = dma.done.wait [#allocation6], 32  }
   0xb   :  { %167 = vsyncadd [#allocation6], 4294967264  ;;  %vm45_vm0 = vcmask 1040384   ;;  %v40_v0 = vld [vmem:[#allocation2] sm:$0xf]  ;;  %vm47_vm1 = vcmask 1042434  }
   0xc   :  { %vm49_vm2 = vcmask 1041408   ;;  %vm51_vm3 = vcmask 1041409   ;;  %vm53_vm4 = vcmask 1043459   ;;  %v42_v1 = vrot.slane %v40_v0, 1  ;;  %v60_v4 = vld [vmem:[#allocation5] sm:$0x3] }
   0xd   :  { %v43_v2 = vrot.slane %v40_v0, 2  ;;  %v44_v3 = vrot.slane %v40_v0, 3  ;;  %vm55_vm5 = vcmask 1042433   ;;  %s172_s0 = smov [#allocation7]   ;;  %s78_s21 = sshll.u32 %s199_s2, 4  ;;  %s79_s21 = int_to_ptr.hbm [resolvable:$true] %s78_s21 }
   0xe   :  { %v46_v5 = vsel %vm45_vm0, %v40_v0, %v42_v1  ;;  %v52_v7 = vsel %vm51_vm3, %v40_v0, %v42_v1  ;;  %s76_s1 = sshll.u32 %s172_s0, 4  ;;  %s77_s1 = int_to_ptr.vmem [resolvable:$true] %s76_s1 }
   0xf   :  { %v48_v6 = vsel %vm47_vm1, %v43_v2, %v44_v3  ;;  %v54_v8 = vsel %vm53_vm4, %v43_v2, %v44_v3 }
  0x10   :  { %v50_v9 = vsel %vm49_vm2, %v46_v5, %v48_v6  ;;  %v56_v10 = vsel %vm55_vm5, %v52_v7, %v54_v8 }
  0x11   :  { %v61_v11 = vadd.f32 %v60_v4, %v50_v9  ;;  %v57_v12 = vrot.slane %v56_v10, 1 }
  0x13   :  { %65 = vst [vmem:[#allocation1] ss:$2 sm:$0xff] %v61_v11  ;;  %v62_v13 = vadd.f32 %v60_v4, %v57_v12 }
  0x15   :  { %67 = vst [vmem:[#allocation1 + $0x1] ss:$2 sm:$0xff] %v62_v13 }
  0x1c   :  { %v68_v14 = vld [vmem:[#allocation1] sm:$0xff] }
  0x1d   :  { %70 = vst [vmem:[#allocation7] sm:$0xf] %v68_v14 }
  0x1e   :  { %81 = dma.vmem_to_hbm [thread:$0]  %s77_s1, 64, %s79_s21, [#allocation4]  }
  0x1f   :  { %168 = dma.done.wait [#allocation4], 64  }
  0x20   :  { %169 = vsyncadd [#allocation4], 4294967232 }
  0x21   :  { %86 = vsyncpa [#allocation3], 1 }
  0x22   :  { %87 = vsyncpa [#allocation6], 1 }
  0x23   :  { %88 = vsyncpa [#allocation4], 1 }

</bundles_post_ra>
